<compile_context>
chip_gen: v5e
topology: v5e:2x2
jax: 0.10.0
libtpu: 0.0.40
codegen_flags: <defaults>
</compile_context>

<pallas_src>
import math

import numpy as np
import jax
import jax.numpy as jnp
from jax.experimental import pallas as pl
from jax.experimental.pallas import tpu as pltpu


def _round_up(n, m):
    return ((n + m - 1) // m) * m


# --------------------------- single fused kernel ---------------------------------
def _make_decoder_kernel(latent_is_one):
    def kernel(z_ref, w1_ref, b1_ref, w2_ref, b2_ref, w3_ref, b3_ref,
               w4_ref, b4_ref, geff_ref, bg_ref, o_ref):

        def dense(x, w_ref, b_ref):
            # default MXU precision (single/low-pass bf16) — see perf review
            return jnp.dot(x, w_ref[...],
                           preferred_element_type=jnp.float32) + b_ref[...]

        # fc1: latent_dim == 1 -> broadcast outer product on the VPU (no MXU K=1 waste)
        if latent_is_one:
            h = jnp.maximum(z_ref[...] * w1_ref[...] + b1_ref[...], 0.0)   # (B,1)*(1,H)
        else:
            h = jnp.maximum(dense(z_ref[...], w1_ref, b1_ref), 0.0)

        h = jnp.maximum(dense(h, w2_ref, b2_ref), 0.0)          # relu(fc2)
        h = jnp.maximum(dense(h, w3_ref, b3_ref), 0.0)          # relu(relu(fc3)) == relu(fc3)

        x = dense(h, w4_ref, b4_ref)                            # (B, Dp); cols >= D are zero

        # Triangle-vertex gather folded into fc4: g[:, k*Fp + f] == x3[:, M[f, j], c]
        # with k = 3*j + c.  geff/bg are w4/b4 columns gathered per the static M.
        # Padded faces (f >= F) have all-zero columns -> 3x3 zero block -> det 0.
        g = dense(h, geff_ref, bg_ref)                          # (B, 9*Fp)
        Fp = geff_ref.shape[1] // 9
        a00, a01, a02, a10, a11, a12, a20, a21, a22 = (
            g[:, k * Fp:(k + 1) * Fp] for k in range(9))        # static lane-aligned slices
        det = (a00 * (a11 * a22 - a12 * a21)
               - a01 * (a10 * a22 - a12 * a20)
               + a02 * (a10 * a21 - a11 * a20))                 # (B, Fp)

        vol = jnp.sum(jnp.abs(det), axis=1, keepdims=True) * (1.0 / 6.0)   # (B, 1)
        # vol**(-1/3) on a (B,1) vector (EUP), then a single broadcast multiply.
        # vol == 0 (degenerate mesh) gives +inf, matching the reference's x / 0.
        inv_scale = jnp.exp(jnp.log(vol) * (-1.0 / 3.0))
        o_ref[...] = x * inv_scale                              # lane-dense (B, Dp) store

    return kernel


# --------------------------------- wrapper ----------------------------------------
def make_decoder(params, M, data_shape, batch_size):
    """Precompute padded / gathered weights once; return jitted forward."""
    B = int(batch_size)
    D = int(math.prod(data_shape))
    L, H = params["w1"].shape
    Dp = _round_up(D, 128)          # 192 -> 256: lane-dense output & x slab
    F = int(M.shape[0])
    Fp = _round_up(F, 128)          # 40 -> 128: lane-dense per-component block

    # fc4 padded to Dp (zero columns beyond D keep padded x exactly zero)
    w4_np = np.asarray(params["w4"], np.float32)                # (H, D)
    b4_np = np.asarray(params["b4"], np.float32).reshape(1, D)
    w4p = jnp.zeros((H, Dp), jnp.float32).at[:, :D].set(w4_np)
    b4p = jnp.zeros((1, Dp), jnp.float32).at[:, :D].set(b4_np)

    # fc4 folded into the gather: G_eff[:, k*Fp + f] = w4[:, 3*M[f,j]+c], k = 3*j+c.
    # Exact (verbatim column copies); built once from the static topology.
    Mnp = np.asarray(M)
    G_eff = np.zeros((H, 9 * Fp), np.float32)
    bG = np.zeros((1, 9 * Fp), np.float32)
    for j in range(3):              # vertex (row of the 3x3)
        for c in range(3):          # xyz component (column of the 3x3)
            k = 3 * j + c
            cols = 3 * Mnp[:, j] + c                            # (F,)
            G_eff[:, k * Fp:k * Fp + F] = w4_np[:, cols]
            bG[:, k * Fp:k * Fp + F] = b4_np[:, cols]
    G_eff = jnp.asarray(G_eff)
    bG = jnp.asarray(bG)

    # Advisory cost estimate (updated for the folded gather + default precision).
    flops = 2 * B * H * (L + 2 * H + Dp + 9 * Fp) + B * (20 * Fp + 2 * Dp)
    bytes_accessed = 4 * (B * L + L * H + 2 * H * H + H * Dp + H * 9 * Fp
                          + 9 * Fp + 4 * H + Dp + B * Dp)
    ce = pl.CostEstimate(flops=flops, transcendentals=2 * B,
                         bytes_accessed=bytes_accessed)

    vmem = pl.BlockSpec(memory_space=pltpu.MemorySpace.VMEM)
    call = pl.pallas_call(
        _make_decoder_kernel(latent_is_one=(L == 1)),
        out_shape=jax.ShapeDtypeStruct((B, Dp), jnp.float32),
        in_specs=[vmem] * 11,
        out_specs=vmem,
        cost_estimate=ce,
        # TODO(synk): for large B, add grid=(B//Bblk,) over the batch with
        # dimension_semantics=("parallel",) to use both v7x TensorCores.
    )

    @jax.jit
    def decoder_forward(z):
        xp = call(z,
                  params["w1"], params["b1"],
                  params["w2"], params["b2"],
                  params["w3"], params["b3"],
                  w4p, b4p, G_eff, bG)         # (B, Dp)
        return xp[:, :D]                       # slice padding off at the very end

    return decoder_forward


# ------------------------- pure-JAX reference for validation ----------------------
def decoder_ref(z, params, M, data_shape):
    B = z.shape[0]
    D = int(math.prod(data_shape))
    h = jnp.maximum(jnp.dot(z, params["w1"]) + params["b1"], 0.0)
    h = jnp.maximum(jnp.dot(h, params["w2"]) + params["b2"], 0.0)
    h = jnp.maximum(jnp.dot(h, params["w3"]) + params["b3"], 0.0)
    x = jnp.dot(h, params["w4"]) + params["b4"]
    x3 = x.reshape(B, D // 3, 3)
    t = x3[:, M]                                                # (B, F, 3, 3)
    det = (t[..., 0, 0] * (t[..., 1, 1] * t[..., 2, 2] - t[..., 1, 2] * t[..., 2, 1])
           - t[..., 0, 1] * (t[..., 1, 0] * t[..., 2, 2] - t[..., 1, 2] * t[..., 2, 0])
           + t[..., 0, 2] * (t[..., 1, 0] * t[..., 2, 1] - t[..., 1, 1] * t[..., 2, 0]))
    scale = (jnp.sum(jnp.abs(det), axis=1) / 6.0) ** (1.0 / 3.0)
    return (x3 / scale[:, None, None]).reshape(B, D)


if __name__ == "__main__":
    # Small synthetic configuration consistent with the module:
    #   data_shape = (1, num_vertices, 3); M = (num_faces, 3) int topology
    B, latent_dim, hidden_dim = 8, 1, 32
    num_vertices, num_faces = 64, 40
    data_shape = (1, num_vertices, 3)
    D = int(math.prod(data_shape))                              # 192

    key = jax.random.PRNGKey(0)
    ks = jax.random.split(key, 10)

    def lin(kw, kb, fan_in, fan_out):
        bound = 1.0 / math.sqrt(fan_in)
        w = jax.random.uniform(kw, (fan_in, fan_out), jnp.float32, -bound, bound)
        b = jax.random.uniform(kb, (1, fan_out), jnp.float32, -bound, bound)
        return w, b

    w1, b1 = lin(ks[0], ks[1], latent_dim, hidden_dim)
    w2, b2 = lin(ks[2], ks[3], hidden_dim, hidden_dim)
    w3, b3 = lin(ks[4], ks[5], hidden_dim, hidden_dim)
    w4, b4 = lin(ks[6], ks[7], hidden_dim, D)
    params = dict(w1=w1, b1=b1, w2=w2, b2=b2, w3=w3, b3=b3, w4=w4, b4=b4)

    M = jax.random.randint(ks[8], (num_faces, 3), 0, num_vertices, dtype=jnp.int32)
    z = jax.random.normal(ks[9], (B, latent_dim), jnp.float32)

    decoder = make_decoder(params, M, data_shape, batch_size=B)
    out = jax.block_until_ready(decoder(z))                     # (B, D)

    ref = jax.block_until_ready(decoder_ref(z, params, M, data_shape))
    assert out.shape == (B, D)
    assert bool(jnp.all(jnp.isfinite(out)))
    assert bool(jnp.allclose(out, ref, rtol=1e-2, atol=1e-2))

    print("KERNEL_OK")
</pallas_src>

<mosaic_0001>
module attributes {stable_mosaic.version = 11 : i64} {
  func.func @kernel(%arg0: memref<8x1xf32, #tpu.memory_space<vmem>>, %arg1: memref<1x32xf32, #tpu.memory_space<vmem>>, %arg2: memref<1x32xf32, #tpu.memory_space<vmem>>, %arg3: memref<32x32xf32, #tpu.memory_space<vmem>>, %arg4: memref<1x32xf32, #tpu.memory_space<vmem>>, %arg5: memref<32x32xf32, #tpu.memory_space<vmem>>, %arg6: memref<1x32xf32, #tpu.memory_space<vmem>>, %arg7: memref<32x256xf32, #tpu.memory_space<vmem>>, %arg8: memref<1x256xf32, #tpu.memory_space<vmem>>, %arg9: memref<32x1152xf32, #tpu.memory_space<vmem>>, %arg10: memref<1x1152xf32, #tpu.memory_space<vmem>>, %arg11: memref<8x256xf32, #tpu.memory_space<vmem>>) attributes {dimension_semantics = [], scalar_prefetch = 0 : i64, scratch_operands = 0 : i64, tpu.core_type = #tpu.core_type<tc>} {
    %c0 = arith.constant 0 : index
    %c0_0 = arith.constant 0 : index
    %0 = vector.load %arg0[%c0, %c0_0] : memref<8x1xf32, #tpu.memory_space<vmem>>, vector<8x1xf32>
    %c0_1 = arith.constant 0 : index
    %c0_2 = arith.constant 0 : index
    %1 = vector.load %arg1[%c0_1, %c0_2] : memref<1x32xf32, #tpu.memory_space<vmem>>, vector<1x32xf32>
    %2 = vector.broadcast %0 : vector<8x1xf32> to vector<8x32xf32>
    %3 = vector.broadcast %1 : vector<1x32xf32> to vector<8x32xf32>
    %4 = arith.mulf %2, %3 : vector<8x32xf32>
    %c0_3 = arith.constant 0 : index
    %c0_4 = arith.constant 0 : index
    %5 = vector.load %arg2[%c0_3, %c0_4] : memref<1x32xf32, #tpu.memory_space<vmem>>, vector<1x32xf32>
    %6 = vector.broadcast %5 : vector<1x32xf32> to vector<8x32xf32>
    %7 = arith.addf %4, %6 : vector<8x32xf32>
    %cst = arith.constant 0.000000e+00 : f32
    %8 = vector.broadcast %cst : f32 to vector<8x32xf32>
    %9 = arith.maximumf %7, %8 : vector<8x32xf32>
    %c0_5 = arith.constant 0 : index
    %c0_6 = arith.constant 0 : index
    %10 = vector.load %arg3[%c0_5, %c0_6] : memref<32x32xf32, #tpu.memory_space<vmem>>, vector<32x32xf32>
    %cst_7 = arith.constant dense<0.000000e+00> : vector<8x32xf32>
    %11 = tpu.matmul %9, %10, %cst_7 {dimension_numbers = #tpu.dot_dimension_numbers<[1], [0], [0], [1], [0, 0, 1, 1], [], []>} : vector<8x32xf32>, vector<32x32xf32>, vector<8x32xf32> -> vector<8x32xf32>
    %c0_8 = arith.constant 0 : index
    %c0_9 = arith.constant 0 : index
    %12 = vector.load %arg4[%c0_8, %c0_9] : memref<1x32xf32, #tpu.memory_space<vmem>>, vector<1x32xf32>
    %13 = vector.broadcast %12 : vector<1x32xf32> to vector<8x32xf32>
    %14 = arith.addf %11, %13 : vector<8x32xf32>
    %cst_10 = arith.constant 0.000000e+00 : f32
    %15 = vector.broadcast %cst_10 : f32 to vector<8x32xf32>
    %16 = arith.maximumf %14, %15 : vector<8x32xf32>
    %c0_11 = arith.constant 0 : index
    %c0_12 = arith.constant 0 : index
    %17 = vector.load %arg5[%c0_11, %c0_12] : memref<32x32xf32, #tpu.memory_space<vmem>>, vector<32x32xf32>
    %cst_13 = arith.constant dense<0.000000e+00> : vector<8x32xf32>
    %18 = tpu.matmul %16, %17, %cst_13 {dimension_numbers = #tpu.dot_dimension_numbers<[1], [0], [0], [1], [0, 0, 1, 1], [], []>} : vector<8x32xf32>, vector<32x32xf32>, vector<8x32xf32> -> vector<8x32xf32>
    %c0_14 = arith.constant 0 : index
    %c0_15 = arith.constant 0 : index
    %19 = vector.load %arg6[%c0_14, %c0_15] : memref<1x32xf32, #tpu.memory_space<vmem>>, vector<1x32xf32>
    %20 = vector.broadcast %19 : vector<1x32xf32> to vector<8x32xf32>
    %21 = arith.addf %18, %20 : vector<8x32xf32>
    %cst_16 = arith.constant 0.000000e+00 : f32
    %22 = vector.broadcast %cst_16 : f32 to vector<8x32xf32>
    %23 = arith.maximumf %21, %22 : vector<8x32xf32>
    %c0_17 = arith.constant 0 : index
    %c0_18 = arith.constant 0 : index
    %24 = vector.load %arg7[%c0_17, %c0_18] : memref<32x256xf32, #tpu.memory_space<vmem>>, vector<32x256xf32>
    %cst_19 = arith.constant dense<0.000000e+00> : vector<8x256xf32>
    %25 = tpu.matmul %23, %24, %cst_19 {dimension_numbers = #tpu.dot_dimension_numbers<[1], [0], [0], [1], [0, 0, 1, 1], [], []>} : vector<8x32xf32>, vector<32x256xf32>, vector<8x256xf32> -> vector<8x256xf32>
    %c0_20 = arith.constant 0 : index
    %c0_21 = arith.constant 0 : index
    %26 = vector.load %arg8[%c0_20, %c0_21] : memref<1x256xf32, #tpu.memory_space<vmem>>, vector<1x256xf32>
    %27 = vector.broadcast %26 : vector<1x256xf32> to vector<8x256xf32>
    %28 = arith.addf %25, %27 : vector<8x256xf32>
    %c0_22 = arith.constant 0 : index
    %c0_23 = arith.constant 0 : index
    %29 = vector.load %arg9[%c0_22, %c0_23] : memref<32x1152xf32, #tpu.memory_space<vmem>>, vector<32x1152xf32>
    %cst_24 = arith.constant dense<0.000000e+00> : vector<8x1152xf32>
    %30 = tpu.matmul %23, %29, %cst_24 {dimension_numbers = #tpu.dot_dimension_numbers<[1], [0], [0], [1], [0, 0, 1, 1], [], []>} : vector<8x32xf32>, vector<32x1152xf32>, vector<8x1152xf32> -> vector<8x1152xf32>
    %c0_25 = arith.constant 0 : index
    %c0_26 = arith.constant 0 : index
    %31 = vector.load %arg10[%c0_25, %c0_26] : memref<1x1152xf32, #tpu.memory_space<vmem>>, vector<1x1152xf32>
    %32 = vector.broadcast %31 : vector<1x1152xf32> to vector<8x1152xf32>
    %33 = arith.addf %30, %32 : vector<8x1152xf32>
    %34 = vector.extract_strided_slice %33 {offsets = [0, 0], sizes = [8, 128], strides = [1, 1]} : vector<8x1152xf32> to vector<8x128xf32>
    %35 = vector.extract_strided_slice %33 {offsets = [0, 128], sizes = [8, 128], strides = [1, 1]} : vector<8x1152xf32> to vector<8x128xf32>
    %36 = vector.extract_strided_slice %33 {offsets = [0, 256], sizes = [8, 128], strides = [1, 1]} : vector<8x1152xf32> to vector<8x128xf32>
    %37 = vector.extract_strided_slice %33 {offsets = [0, 384], sizes = [8, 128], strides = [1, 1]} : vector<8x1152xf32> to vector<8x128xf32>
    %38 = vector.extract_strided_slice %33 {offsets = [0, 512], sizes = [8, 128], strides = [1, 1]} : vector<8x1152xf32> to vector<8x128xf32>
    %39 = vector.extract_strided_slice %33 {offsets = [0, 640], sizes = [8, 128], strides = [1, 1]} : vector<8x1152xf32> to vector<8x128xf32>
    %40 = vector.extract_strided_slice %33 {offsets = [0, 768], sizes = [8, 128], strides = [1, 1]} : vector<8x1152xf32> to vector<8x128xf32>
    %41 = vector.extract_strided_slice %33 {offsets = [0, 896], sizes = [8, 128], strides = [1, 1]} : vector<8x1152xf32> to vector<8x128xf32>
    %42 = vector.extract_strided_slice %33 {offsets = [0, 1024], sizes = [8, 128], strides = [1, 1]} : vector<8x1152xf32> to vector<8x128xf32>
    %43 = arith.mulf %38, %42 : vector<8x128xf32>
    %44 = arith.mulf %39, %41 : vector<8x128xf32>
    %45 = arith.subf %43, %44 : vector<8x128xf32>
    %46 = arith.mulf %34, %45 : vector<8x128xf32>
    %47 = arith.mulf %37, %42 : vector<8x128xf32>
    %48 = arith.mulf %39, %40 : vector<8x128xf32>
    %49 = arith.subf %47, %48 : vector<8x128xf32>
    %50 = arith.mulf %35, %49 : vector<8x128xf32>
    %51 = arith.subf %46, %50 : vector<8x128xf32>
    %52 = arith.mulf %37, %41 : vector<8x128xf32>
    %53 = arith.mulf %38, %40 : vector<8x128xf32>
    %54 = arith.subf %52, %53 : vector<8x128xf32>
    %55 = arith.mulf %36, %54 : vector<8x128xf32>
    %56 = arith.addf %51, %55 : vector<8x128xf32>
    %57 = math.absf %56 : vector<8x128xf32>
    %cst_27 = arith.constant dense<0.000000e+00> : vector<8xf32>
    %58 = vector.multi_reduction <add>, %57, %cst_27 [1] : vector<8x128xf32> to vector<8xf32>
    %59 = vector.shape_cast %58 : vector<8xf32> to vector<8x1xf32>
    %cst_28 = arith.constant 0.166666672 : f32
    %60 = vector.broadcast %cst_28 : f32 to vector<8x1xf32>
    %61 = arith.mulf %59, %60 : vector<8x1xf32>
    %62 = math.log %61 : vector<8x1xf32>
    %cst_29 = arith.constant -0.333333343 : f32
    %63 = vector.broadcast %cst_29 : f32 to vector<8x1xf32>
    %64 = arith.mulf %62, %63 : vector<8x1xf32>
    %65 = math.exp %64 : vector<8x1xf32>
    %66 = vector.broadcast %65 : vector<8x1xf32> to vector<8x256xf32>
    %67 = arith.mulf %28, %66 : vector<8x256xf32>
    %c0_30 = arith.constant 0 : index
    %c0_31 = arith.constant 0 : index
    %68 = vector.load %arg11[%c0_30, %c0_31] : memref<8x256xf32, #tpu.memory_space<vmem>>, vector<8x256xf32>
    tpu.vector_store %arg11[%c0_30, %c0_31], %67 {strides = array<i32>} : memref<8x256xf32, #tpu.memory_space<vmem>>, vector<8x256xf32>,
    return
  }
}

</mosaic_0001>

<bundles_post_ra>
// kernel: decoder_forward.1
= control target key start
LH: loop header
LB: loop body
LE: loop exit
PB: predicated region body
PF: predicated region fallthrough
CT: control target
= control target key end

     0   :  { %16 = vsyncpa [#allocation3], 0  ;;  %s812_s0 = inlined_call_operand.vmem [shape: f32[8,1], index: 0, kind: input, shape index: {}]   ;;  %s813_s1 = inlined_call_operand.vmem [shape: f32[1,32], index: 1, kind: input, shape index: {}]   ;;  %s814_s2 = inlined_call_operand.vmem [shape: f32[1,32], index: 2, kind: input, shape index: {}]   ;;  %s815_s3 = inlined_call_operand.hbm [shape: f32[32,32], index: 3, kind: input, shape index: {}]   ;;  %s816_s4 = inlined_call_operand.vmem [shape: f32[1,32], index: 4, kind: input, shape index: {}]   ;;  %s817_s5 = inlined_call_operand.hbm [shape: f32[32,32], index: 5, kind: input, shape index: {}]   ;;  %s818_s6 = inlined_call_operand.vmem [shape: f32[1,32], index: 6, kind: input, shape index: {}]   ;;  %s819_s7 = inlined_call_operand.hbm [shape: f32[32,256], index: 7, kind: input, shape index: {}]   ;;  %s820_s8 = inlined_call_operand.vmem [shape: f32[1,256], index: 8, kind: input, shape index: {}]   ;;  %s821_s9 = inlined_call_operand.hbm [shape: f32[32,1152], index: 9, kind: input, shape index: {}]   ;;  %s822_s10 = inlined_call_operand.vmem [shape: f32[1,1152], index: 10, kind: input, shape index: {}]   ;;  %s823_s11 = inlined_call_operand.hbm [shape: f32[8,256], index: 11, kind: output, shape index: {}]  }
   0x1   :  { %17 = vsyncpa [#allocation6], 0 }
   0x2   :  { %18 = vsyncpa [#allocation9], 0 }
   0x3   :  { %19 = vsyncpa [#allocation4], 0  ;;  %s45_s19 = sshll.u32 %s817_s5, 4  ;;  %s688_s20 = smov [#allocation5]   ;;  %s46_s19 = int_to_ptr.hbm [resolvable:$true] %s45_s19 }
   0x4   :  { %s47_s21 = sshll.u32 %s688_s20, 4  ;;  %s30_s24 = sshll.u32 %s815_s3, 4  ;;  %s48_s21 = int_to_ptr.vmem [resolvable:$true] %s47_s21  ;;  %s31_s24 = int_to_ptr.hbm [resolvable:$true] %s30_s24 }
   0x5   :  { %s689_s25 = smov 128   ;;  %s690_s26 = smov 8  }
   0x6   :  { %53 = dma.hbm_to_vmem [thread:$0]  %s46_s19, 512, %s48_s21, [#allocation6], %s689_s25, %s689_s25, %s690_s26  }
   0x7   :  { %s691_s27 = smov [#allocation2]   ;;  %s60_s12 = sshll.u32 %s819_s7, 4  ;;  %s61_s12 = int_to_ptr.hbm [resolvable:$true] %s60_s12 }
   0x8   :  { %s32_s28 = sshll.u32 %s691_s27, 4  ;;  %s692_s5 = smov [#allocation7]   ;;  %s33_s28 = int_to_ptr.vmem [resolvable:$true] %s32_s28 }
   0x9   :  { %38 = dma.hbm_to_vmem [thread:$0]  %s31_s24, 512, %s33_s28, [#allocation3], %s689_s25, %s689_s25, %s690_s26  }
   0xa   :  { %s62_s13 = sshll.u32 %s692_s5, 4  ;;  %s75_s3 = sshll.u32 %s821_s9, 4  ;;  %s63_s13 = int_to_ptr.vmem [resolvable:$true] %s62_s13  ;;  %s76_s3 = int_to_ptr.hbm [resolvable:$true] %s75_s3 }
   0xb   :  { %s693_s16 = smov 256   ;;  %s694_s17 = smov 16  }
   0xc   :  { %68 = dma.hbm_to_vmem [thread:$0]  %s61_s12, 1024, %s63_s13, [#allocation6], %s693_s16, %s693_s16, %s694_s17  }
   0xd   :  { %s695_s18 = smov [#allocation8]   ;;  %s696_s20 = smov 1152  }
   0xe   :  { %s77_s19 = sshll.u32 %s695_s18, 4  ;;  %s697_s21 = smov 72   ;;  %s78_s19 = int_to_ptr.vmem [resolvable:$true] %s77_s19 }
   0xf   :  { %83 = dma.hbm_to_vmem [thread:$0]  %s76_s3, 4608, %s78_s19, [#allocation9], %s696_s20, %s696_s20, %s697_s21  }
  0x10   :  { %680 = dma.done.wait [#allocation3], 512  }
  0x11   :  { %681 = vsyncadd [#allocation3], 4294966784 }
  0x12   :  { %682 = dma.done.wait [#allocation6], 1536  }
  0x13   :  { %683 = vsyncadd [#allocation6], 4294965760 }
  0x14   :  { %684 = dma.done.wait [#allocation9], 4608  }
  0x15   :  { %685 = vsyncadd [#allocation9], 4294962688  ;;  %v698_v0 = vmov 0   ;;  %v102_v1 = vld [vmem:[%s812_s0] sm:$0xff]  ;;  %v122_v2 = vld [vmem:[#allocation2 + $0x18] sm:$0xff]  ;;  %vm127_vm0 = vcmask 261120  }
  0x16   :  { %550 = vset.pattern.permute.xlu0 %v698_v0  ;;  %143 = vmatpush.msra.mxu0 %v122_v2  ;;  %v121_v3 = vld [vmem:[#allocation2 + $0x10] sm:$0xff]  ;;  %v120_v4 = vld [vmem:[#allocation2 + $0x8] sm:$0xff]  ;;  %v119_v5 = vld [vmem:[#allocation2] sm:$0xff]  ;;  %s699_s30 = smov [#allocation10]   ;;  %s513_s14 = sshll.u32 %s823_s11, 4  ;;  %s514_s14 = int_to_ptr.hbm [resolvable:$true] %s513_s14 }
  0x17   :  { %106 = vperm.xlu0 %550, %v102_v1   ;;  %v155_v6 = vld [vmem:[#allocation5 + $0x18] sm:$0xff]  ;;  %v551_v7 = vld [vmem:[%s813_s1] ss:$0 sm:$0xff]  ;;  %v154_v13 = vld [vmem:[#allocation5 + $0x10] sm:$0xff]  ;;  %s511_s12 = sshll.u32 %s699_s30, 4  ;;  %s512_s12 = int_to_ptr.vmem [resolvable:$true] %s511_s12 }
  0x18   :  { %144 = vmatpush.msra.mxu0 %v121_v3  ;;  %175 = vmatpush.msra.mxu1 %v155_v6  ;;  %v552_v8 = vld [vmem:[%s814_s2] ss:$0 sm:$0xff]  ;;  %v153_v14 = vld [vmem:[#allocation5 + $0x8] sm:$0xff]  ;;  %v190_v16 = vld [vmem:[#allocation7 + $0x30] sm:$0xff] }
  0x19   :  { %v152_v15 = vld [vmem:[#allocation5] sm:$0xff]  ;;  %v191_v17 = vld [vmem:[#allocation7 + $0x38] sm:$0xff]  ;;  %213 = vmatpush.msra.mxu2 %v190_v16  ;;  %v189_v25 = vld [vmem:[#allocation7 + $0x28] sm:$0xff] }
  0x1a   :  { %145 = vmatpush.msra.mxu0 %v120_v4  ;;  %176 = vmatpush.msra.mxu1 %v154_v13  ;;  %v268_v18 = vld [vmem:[#allocation8 + $0xd8] sm:$0xff]  ;;  %v269_v19 = vld [vmem:[#allocation8 + $0xe0] sm:$0xff]  ;;  %v259_v26 = vld [vmem:[#allocation8 + $0x90] sm:$0xff] }
  0x1b   :  { %233 = vmatpush.msra.mxu3 %v191_v17  ;;  %v553_v20 = vld [vmem:[%s816_s4] ss:$0 sm:$0xff]  ;;  %v260_v27 = vld [vmem:[#allocation8 + $0x98] sm:$0xff]  ;;  %v186_v28 = vld [vmem:[#allocation7 + $0x10] sm:$0xff] }
  0x1c   :  { %146 = vmatpush.msra.mxu0 %v119_v5  ;;  %177 = vmatpush.msra.mxu1 %v153_v14  ;;  %v188_v24 = vld [vmem:[#allocation7 + $0x20] sm:$0xff]  ;;  %v187_v29 = vld [vmem:[#allocation7 + $0x18] sm:$0xff]  ;;  %v250_v30 = vld [vmem:[#allocation8 + $0x48] sm:$0xff] }
  0x1d   :  { %214 = vmatpush.msra.mxu2 %v188_v24  ;;  %234 = vmatpush.msra.mxu3 %v189_v25  ;;  %v251_v31 = vld [vmem:[#allocation8 + $0x50] sm:$0xff]  ;;  %v184_v32 = vld [vmem:[#allocation7] sm:$0xff]  ;;  %v185_v33 = vld [vmem:[#allocation7 + $0x8] sm:$0xff] }
  0x1e   :  { %178 = vmatpush.msra.mxu1 %v152_v15  ;;  %311 = vmatpush.msrb.mxu0 %v268_v18  ;;  %v241_v34 = vld [vmem:[#allocation8] sm:$0xff]  ;;  %v242_v35 = vld [vmem:[#allocation8 + $0x8] sm:$0xff]  ;;  %v271_v37 = vld [vmem:[#allocation8 + $0xf0] sm:$0xff] }
  0x1f   :  { %215 = vmatpush.msra.mxu2 %v186_v28  ;;  %235 = vmatpush.msra.mxu3 %v187_v29  ;;  %v270_v36 = vld [vmem:[#allocation8 + $0xe8] sm:$0xff]  ;;  %v272_v38 = vld [vmem:[#allocation8 + $0xf8] sm:$0xff]  ;;  %v273_v39 = vld [vmem:[#allocation8 + $0x100] sm:$0xff] }
  0x20   :  { %331 = vmatpush.msrb.mxu1 %v269_v19  ;;  %312 = vmatpush.msrb.mxu0 %v259_v26  ;;  %v261_v40 = vld [vmem:[#allocation8 + $0xa0] sm:$0xff]  ;;  %v262_v41 = vld [vmem:[#allocation8 + $0xa8] sm:$0xff]  ;;  %v263_v42 = vld [vmem:[#allocation8 + $0xb0] sm:$0xff] }
  0x21   :  { %216 = vmatpush.msra.mxu2 %v184_v32  ;;  %236 = vmatpush.msra.mxu3 %v185_v33  ;;  %v264_v43 = vld [vmem:[#allocation8 + $0xb8] sm:$0xff]  ;;  %v253_v45 = vld [vmem:[#allocation8 + $0x60] sm:$0xff]  ;;  %v254_v46 = vld [vmem:[#allocation8 + $0x68] sm:$0xff] }
  0x22   :  { %332 = vmatpush.msrb.mxu1 %v260_v27  ;;  %313 = vmatpush.msrb.mxu0 %v250_v30  ;;  %v252_v44 = vld [vmem:[#allocation8 + $0x58] sm:$0xff]  ;;  %v255_v47 = vld [vmem:[#allocation8 + $0x70] sm:$0xff]  ;;  %v245_v50 = vld [vmem:[#allocation8 + $0x20] sm:$0xff] }
  0x23   :  { %351 = vmatpush.msrb.mxu2 %v270_v36  ;;  %371 = vmatpush.msrb.mxu3 %v271_v37  ;;  %v243_v48 = vld [vmem:[#allocation8 + $0x10] sm:$0xff]  ;;  %v244_v49 = vld [vmem:[#allocation8 + $0x18] sm:$0xff]  ;;  %v246_v51 = vld [vmem:[#allocation8 + $0x28] sm:$0xff] }
  0x24   :  { %333 = vmatpush.msrb.mxu1 %v251_v31  ;;  %314 = vmatpush.msrb.mxu0 %v241_v34  ;;  %v554_v52 = vld [vmem:[%s818_s6] ss:$0 sm:$0xff]  ;;  %v274_v56 = vld [vmem:[#allocation8 + $0x108] sm:$0xff]  ;;  %v275_v57 = vld [vmem:[#allocation8 + $0x110] sm:$0xff] }
  0x25   :  { %352 = vmatpush.msrb.mxu2 %v261_v40  ;;  %372 = vmatpush.msrb.mxu3 %v262_v41  ;;  %v276_v58 = vld [vmem:[#allocation8 + $0x118] sm:$0xff]  ;;  %v265_v59 = vld [vmem:[#allocation8 + $0xc0] sm:$0xff]  ;;  %v266_v60 = vld [vmem:[#allocation8 + $0xc8] sm:$0xff] }
  0x26   :  { %334 = vmatpush.msrb.mxu1 %v242_v35  ;;  %v267_v61 = vld [vmem:[#allocation8 + $0xd0] sm:$0xff]  ;;  %v256_v62 = vld [vmem:[#allocation8 + $0x78] sm:$0xff]  ;;  %v257_v63 = vld [vmem:[#allocation8 + $0x80] sm:$0xff] }
  0x27   :  { %353 = vmatpush.msrb.mxu2 %v252_v44  ;;  %373 = vmatpush.msrb.mxu3 %v253_v45  ;;  %v258_v0 = vld [vmem:[#allocation8 + $0x88] sm:$0xff]  ;;  %v247_v1 = vld [vmem:[#allocation8 + $0x30] sm:$0xff]  ;;  %v248_v2 = vld [vmem:[#allocation8 + $0x38] sm:$0xff] }
  0x28   :  { %v249_v3 = vld [vmem:[#allocation8 + $0x40] sm:$0xff] }
  0x29   :  { %354 = vmatpush.msrb.mxu2 %v243_v48  ;;  %374 = vmatpush.msrb.mxu3 %v244_v49 }
  0x89   :  { %v107_v9 = vpop.permute.xlu0 %106 }
  0x8a   :  { %v112_v10 = vmul.f32 %v551_v7, %v107_v9 }
  0x8c   :  { %v117_v11 = vadd.f32 %v552_v8, %v112_v10 }
  0x8e   :  { %v118_v12 = vmax.f32 %v117_v11, 0.0  ;;  %v555_v11 = vld [vmem:[%s822_s10 + $0x8] ss:$0 sm:$0xff] }
  0x90   :  { %525 = vmatmul.msk.f32.vlgmr.msra.gmra.mxu0 %vm127_vm0, %v118_v12  ;;  %v277_v12 = vld [vmem:[%s822_s10] sm:$0xff] }
  0x91   :  { %391 = vmatpush.msra.mxu0 %v272_v38  ;;  %v285_v14 = vperm.slane %v277_v12, 4  ;;  %v284_v15 = vperm.slane %v277_v12, 3  ;;  %v286_v16 = vperm.slane %v277_v12, 5  ;;  %v287_v17 = vperm.slane %v277_v12, 6 }
  0x92   :  { %v288_v18 = vperm.slane %v277_v12, 7  ;;  %v282_v26 = vperm.slane %v277_v12, 1  ;;  %v283_v30 = vperm.slane %v277_v12, 2 }
  0x93   :  { %392 = vmatpush.msra.mxu0 %v263_v42 }
  0x95   :  { %393 = vmatpush.msra.mxu0 %v254_v46 }
  0x97   :  { %394 = vmatpush.msra.mxu0 %v245_v50 }
 0x10d   :  { %v148_v21 = vpop.f32.mrf.mxu0 }
 0x10e   :  { %v149_v22 = vadd.f32 %v553_v20, %v148_v21  ;;  %v281_v21 = vperm.slane %v277_v12, 0 }
 0x110   :  { %v151_v23 = vmax.f32 %v149_v22, 0.0 }
 0x112   :  { %526 = vmatmul.msk.f32.vlgmr.msra.gmra.mxu1 %vm127_vm0, %v151_v23 }
 0x113   :  { %411 = vmatpush.msra.mxu1 %v273_v39 }
 0x115   :  { %412 = vmatpush.msra.mxu1 %v264_v43 }
 0x117   :  { %413 = vmatpush.msra.mxu1 %v255_v47 }
 0x119   :  { %414 = vmatpush.msra.mxu1 %v246_v51 }
 0x18f   :  { %v180_v53 = vpop.f32.mrf.mxu1 }
 0x190   :  { %v181_v54 = vadd.f32 %v554_v52, %v180_v53 }
 0x192   :  { %v183_v55 = vmax.f32 %v181_v54, 0.0  ;;  %v192_v54 = vld [vmem:[%s820_s8] sm:$0x3] }
 0x194   :  { %527 = vmatmul.msk.f32.vlgmr.msra.gmra.mxu2 %vm127_vm0, %v183_v55  ;;  %528 = vmatmul.msk.f32.vlgmr.msra.gmra.mxu3 %vm127_vm0, %v183_v55 }
 0x195   :  { %529 = vmatmul.msk.f32.vlgmr.msrb.gmra.mxu0 %vm127_vm0, %v183_v55  ;;  %530 = vmatmul.msk.f32.vlgmr.msrb.gmra.mxu1 %vm127_vm0, %v183_v55 }
 0x196   :  { %431 = vmatpush.msra.mxu2 %v274_v56  ;;  %451 = vmatpush.msra.mxu3 %v275_v57  ;;  %v194_v56 = vperm.slane %v192_v54, 0  ;;  %v195_v57 = vperm.slane %v192_v54, 1 }
 0x197   :  { %471 = vmatpush.msrb.mxu0 %v276_v58 }
 0x198   :  { %432 = vmatpush.msra.mxu2 %v265_v59  ;;  %452 = vmatpush.msra.mxu3 %v266_v60 }
 0x199   :  { %472 = vmatpush.msrb.mxu0 %v267_v61 }
 0x19a   :  { %433 = vmatpush.msra.mxu2 %v256_v62  ;;  %453 = vmatpush.msra.mxu3 %v257_v63 }
 0x19b   :  { %473 = vmatpush.msrb.mxu0 %v258_v0 }
 0x19c   :  { %531 = vmatmul.msk.f32.vlgmr.msrb.gmra.mxu2 %vm127_vm0, %v183_v55  ;;  %532 = vmatmul.msk.f32.vlgmr.msrb.gmra.mxu3 %vm127_vm0, %v183_v55 }
 0x19d   :  { %533 = vmatmul.msk.f32.vlgmr.msra.gmra.mxu0 %vm127_vm0, %v183_v55  ;;  %534 = vmatmul.msk.f32.vlgmr.msra.gmra.mxu1 %vm127_vm0, %v183_v55 }
 0x19e   :  { %434 = vmatpush.msra.mxu2 %v247_v1  ;;  %454 = vmatpush.msra.mxu3 %v248_v2 }
 0x19f   :  { %474 = vmatpush.msrb.mxu0 %v249_v3 }
 0x1a4   :  { %535 = vmatmul.msk.f32.vlgmr.msra.gmra.mxu2 %vm127_vm0, %v183_v55  ;;  %536 = vmatmul.msk.f32.vlgmr.msra.gmra.mxu3 %vm127_vm0, %v183_v55 }
 0x1a5   :  { %537 = vmatmul.msk.f32.vlgmr.msrb.gmra.mxu0 %vm127_vm0, %v183_v55 }
 0x212   :  { %v316_v4 = vpop.f32.mrf.mxu0  ;;  %v336_v8 = vpop.f32.mrf.mxu1 }
 0x213   :  { %v317_v37 = vadd.f32 %v316_v4, %v281_v21  ;;  %v337_v38 = vadd.f32 %v336_v8, %v282_v26 }
 0x217   :  { %v218_v5 = vpop.f32.mrf.mxu2  ;;  %v238_v6 = vpop.f32.mrf.mxu3 }
 0x218   :  { %v219_v58 = vadd.f32 %v218_v5, %v194_v56  ;;  %v239_v59 = vadd.f32 %v238_v6, %v195_v57 }
 0x21a   :  { %v396_v7 = vpop.f32.mrf.mxu0  ;;  %v416_v19 = vpop.f32.mrf.mxu1 }
 0x21b   :  { %v397_v22 = vadd.f32 %v396_v7, %v285_v14  ;;  %v417_v27 = vadd.f32 %v416_v19, %v286_v16 }
 0x21f   :  { %v356_v9 = vpop.f32.mrf.mxu2  ;;  %v376_v10 = vpop.f32.mrf.mxu3 }
 0x220   :  { %v377_v23 = vadd.f32 %v376_v10, %v284_v15  ;;  %v357_v42 = vadd.f32 %v356_v9, %v283_v30 }
 0x222   :  { %v476_v13 = vpop.f32.mrf.mxu0 }
 0x223   :  { %v477_v20 = vadd.f32 %v555_v11, %v476_v13 }
 0x225   :  { %v479_v31 = vmul.f32 %v477_v20, %v397_v22  ;;  %v483_v32 = vmul.f32 %v477_v20, %v377_v23 }
 0x227   :  { %v436_v24 = vpop.f32.mrf.mxu2  ;;  %v456_v25 = vpop.f32.mrf.mxu3 }
 0x228   :  { %v437_v28 = vadd.f32 %v436_v24, %v287_v17  ;;  %v457_v29 = vadd.f32 %v456_v25, %v288_v18 }
 0x22a   :  { %v484_v33 = vmul.f32 %v437_v28, %v417_v27  ;;  %v489_v34 = vmul.f32 %v437_v28, %v397_v22  ;;  %v480_v35 = vmul.f32 %v457_v29, %v417_v27  ;;  %v488_v36 = vmul.f32 %v457_v29, %v377_v23 }
 0x22c   :  { %v485_v39 = vsub.f32 %v483_v32, %v484_v33  ;;  %v481_v40 = vsub.f32 %v479_v31, %v480_v35  ;;  %v490_v41 = vsub.f32 %v488_v36, %v489_v34 }
 0x22e   :  { %v482_v43 = vmul.f32 %v481_v40, %v317_v37  ;;  %v486_v44 = vmul.f32 %v485_v39, %v337_v38  ;;  %v491_v46 = vmul.f32 %v490_v41, %v357_v42 }
 0x230   :  { %v487_v45 = vsub.f32 %v482_v43, %v486_v44 }
 0x232   :  { %v492_v47 = vadd.f32 %v491_v46, %v487_v45 }
 0x234   :  { %v493_v48 = vand.u32 2147483647, %v492_v47 }
 0x236   :  { %494 = vadd.xlane.f32.xlu0 %v493_v48 }
 0x2a9   :  { %v495_v49 = vpop.xlane.xlu0 %494 }
 0x2aa   :  { %v496_v50 = vmul.f32 0.16666667, %v495_v49 }
 0x2ac   :  { %556 = vlog2.f32 %v496_v50 }
 0x2b2   :  { %v557_v51 = vpop.eup %556 }
 0x2b3   :  { %v498_v52 = vmul.f32 0.6931472, %v557_v51 }
 0x2b5   :  { %v499_v53 = vmul.f32 -0.33333334, %v498_v52 }
 0x2b7   :  { %v500_v55 = vmul.f32 1.442695, %v499_v53 }
 0x2b9   :  { %558 = vpow2.f32 %v500_v55 }
 0x2bf   :  { %v559_v60 = vpop.eup %558 }
 0x2c0   :  { %v502_v61 = vmul.f32 %v559_v60, %v219_v58  ;;  %v503_v62 = vmul.f32 %v559_v60, %v239_v59 }
 0x2c2   :  { %504 = vst [vmem:[#allocation10] sm:$0xff] %v502_v61 }
 0x2c3   :  { %505 = vst [vmem:[#allocation10 + $0x8] sm:$0xff] %v503_v62 }
 0x2c4   :  { %516 = dma.vmem_to_hbm [thread:$0]  %s512_s12, 256, %s514_s14, [#allocation4]  }
 0x2c5   :  { %686 = dma.done.wait [#allocation4], 256  }
 0x2c6   :  { %687 = vsyncadd [#allocation4], 4294967040 }
 0x2c7   :  { %521 = vsyncpa [#allocation3], 1 }
 0x2c8   :  { %522 = vsyncpa [#allocation6], 1 }
 0x2c9   :  { %523 = vsyncpa [#allocation9], 1 }
 0x2ca   :  { %524 = vsyncpa [#allocation4], 1 }

</bundles_post_ra>
